<compile_context>
chip_gen: v6e
topology: v6e:2x2x1
jax: 0.10.0
libtpu: 0.0.40
codegen_flags: <defaults>
</compile_context>

<pallas_src>
import functools

import jax
import jax.numpy as jnp
from jax.experimental import pallas as pl
from jax.experimental.pallas import tpu as pltpu


def _focal_loss_kernel(x_ref, t_ref, o_ref, *, alpha, gamma, hw):
    """x_ref: (1, C, TR, 128) logits; t_ref: (1, 1, TR, 128) int targets;
       o_ref: (1, 1, 1, 128) f32 per-lane partial sums for this (n, t) tile."""
    C = x_ref.shape[1]
    TR = x_ref.shape[2]
    t_idx = pl.program_id(1)

    tg = t_ref[0, 0].astype(jnp.int32)                       # (TR, 128)

    # Running max over classes — short unrolled loop on dense (TR, 128) vregs.
    m = x_ref[0, 0].astype(jnp.float32)
    for c in range(1, C):
        m = jnp.maximum(m, x_ref[0, c].astype(jnp.float32))

    # Sum of exponentials + select target logit / target exponential.
    s = jnp.zeros((TR, 128), jnp.float32)
    e_t = jnp.zeros((TR, 128), jnp.float32)
    x_t = jnp.zeros((TR, 128), jnp.float32)
    for c in range(C):
        xc = x_ref[0, c].astype(jnp.float32)
        e = jnp.exp(xc - m)
        s = s + e
        sel = tg == c
        x_t = jnp.where(sel, xc, x_t)
        e_t = jnp.where(sel, e, e_t)

    ce = jnp.log(s) + (m - x_t)        # logsumexp(x) - x[target]  (per pixel)
    p = e_t / s                        # softmax prob of target = exp(-ce)

    om = 1.0 - p
    if gamma == 0:
        w = jnp.ones_like(om)
    elif gamma == 1:
        w = om
    elif gamma == 2:
        w = om * om                    # cheap VPU path, no pow
    else:
        w = jnp.maximum(om, 0.0) ** gamma

    focal = (alpha * w) * ce

    # Mask the ragged tail (out-of-bounds rows of the last tile and/or a
    # partial final 128-lane row) using the global pixel index.
    rows = jax.lax.broadcasted_iota(jnp.int32, (TR, 128), 0)
    lanes = jax.lax.broadcasted_iota(jnp.int32, (TR, 128), 1)
    gpix = (t_idx * TR + rows) * 128 + lanes
    focal = jnp.where(gpix < hw, focal, 0.0)

    # One small cross-sublane reduce per tile; 512 B writeback.
    o_ref[...] = jnp.sum(focal, axis=0)[None, None, None, :]


def focal_loss(inputs, targets, *, alpha=0.5, gamma=2):
    """inputs: (N, C, H, W) float logits (NCHW, like PyTorch).
       targets: (N, H, W) integer class indices in [0, C).
       Returns scalar float32 focal loss (mean-reduced)."""
    N, C, H, W = inputs.shape
    HW = H * W

    # Keep targets in a narrow native integer dtype for the DMA; only widen
    # if they arrive as something Mosaic can't take (e.g. int64 / float).
    if (not jnp.issubdtype(targets.dtype, jnp.integer)
            or jnp.dtype(targets.dtype).itemsize > 4):
        targets = targets.astype(jnp.int32)

    x3 = inputs.reshape(N, C, HW)          # free reshape, keep input dtype
    t3 = targets.reshape(N, 1, HW)

    # Split H*W into (R, 128): lane-dense AND sublane-dense layout.
    HWp = pl.cdiv(HW, 128) * 128
    if HWp != HW:
        # Rare path (H*W not a multiple of 128): one extra HBM copy.
        # TODO(synk): use an Element-indexed ragged block if this becomes hot.
        x3 = jnp.pad(x3, ((0, 0), (0, 0), (0, HWp - HW)))
        t3 = jnp.pad(t3, ((0, 0), (0, 0), (0, HWp - HW)))
    R = HWp // 128
    x4 = x3.reshape(N, C, R, 128)
    t4 = t3.reshape(N, 1, R, 128)

    x_item = jnp.dtype(x4.dtype).itemsize
    t_item = jnp.dtype(t4.dtype).itemsize

    # Generation-aware VMEM budget (v5e/v6e: 128 MiB, v7x: 64 MiB per TC).
    try:
        vmem_cap = int(pltpu.get_tpu_info().vmem_capacity_bytes)
    except Exception:
        vmem_cap = 64 * 1024 * 1024            # conservative (v7x per-TC)
    vmem_limit = int(vmem_cap * 3 // 4)

    # Per 128-pixel row: double-buffered logits + targets + ~12 live f32 temps.
    bytes_per_row = 128 * (2 * C * x_item + 2 * t_item + 12 * 4)
    tr_budget = max(8, (vmem_limit * 3 // 5) // bytes_per_row)

    # Ensure enough grid steps for pipelining (and both v7x TCs when N == 1).
    min_steps = 8
    tr_split = pl.cdiv(R, max(1, pl.cdiv(min_steps, N)))

    TR = min(tr_budget, tr_split, R)
    if TR < R:
        mult = 16 if TR >= 16 else 8           # sublane-aligned (bf16-friendly)
        TR = max(8, (TR // mult) * mult)
        if TR >= R:
            TR = R
    nt = pl.cdiv(R, TR)

    kernel = functools.partial(
        _focal_loss_kernel, alpha=float(alpha), gamma=gamma, hw=HW)

    cost = pl.CostEstimate(
        flops=int(N * R * 128 * (6 * C + 16)),
        transcendentals=int(N * R * 128 * (C + 1)),
        bytes_accessed=int(N * C * R * 128 * x_item
                           + N * R * 128 * t_item
                           + N * nt * 128 * 4),
    )

    partials = pl.pallas_call(
        kernel,
        out_shape=jax.ShapeDtypeStruct((N, nt, 1, 128), jnp.float32),
        grid_spec=pltpu.PrefetchScalarGridSpec(
            num_scalar_prefetch=0,
            grid=(N, nt),
            in_specs=[
                pl.BlockSpec((1, C, TR, 128), lambda n, t: (n, 0, t, 0)),
                pl.BlockSpec((1, 1, TR, 128), lambda n, t: (n, 0, t, 0)),
            ],
            out_specs=pl.BlockSpec((1, 1, 1, 128), lambda n, t: (n, t, 0, 0)),
        ),
        compiler_params=pltpu.CompilerParams(
            dimension_semantics=("parallel", "parallel"),
            vmem_limit_bytes=vmem_limit),
        cost_estimate=cost,
    )(x4, t4)

    return jnp.sum(partials) / jnp.float32(N * HW)


def _focal_loss_ref(inputs, targets, alpha=0.5, gamma=2):
    # Pure-JAX reference mirroring the PyTorch module.
    N, C, H, W = inputs.shape
    x = jnp.transpose(inputs, (0, 2, 3, 1)).reshape(-1, C).astype(jnp.float32)
    t = targets.reshape(-1).astype(jnp.int32)
    logp = jax.nn.log_softmax(x, axis=-1)
    ce = -jnp.take_along_axis(logp, t[:, None], axis=-1)[:, 0]
    p = jnp.exp(-ce)
    return jnp.mean(alpha * (1.0 - p) ** gamma * ce)


if __name__ == "__main__":
    key = jax.random.PRNGKey(0)
    kx, kt = jax.random.split(key)

    N, C, H, W = 2, 4, 16, 16
    x = jax.random.normal(kx, (N, C, H, W), dtype=jnp.float32)
    t = jax.random.randint(kt, (N, H, W), 0, C, dtype=jnp.int32)

    loss = focal_loss(x, t, alpha=0.5, gamma=2)
    jax.block_until_ready(loss)

    ref = _focal_loss_ref(x, t, alpha=0.5, gamma=2)
    assert jnp.allclose(loss, ref, rtol=1e-4, atol=1e-6), (loss, ref)

    print("KERNEL_OK")
</pallas_src>

<mosaic_0001>
module attributes {stable_mosaic.version = 11 : i64} {
  func.func @_focal_loss_kernel(%arg0: i32, %arg1: i32, %arg2: memref<1x4x2x128xf32, #tpu.memory_space<vmem>>, %arg3: memref<1x1x2x128xi32, #tpu.memory_space<vmem>>, %arg4: memref<1x1x1x128xf32, #tpu.memory_space<vmem>>) attributes {dimension_semantics = [#tpu.dimension_semantics<parallel>, #tpu.dimension_semantics<parallel>], iteration_bounds = array<i64: 2, 1>, scalar_prefetch = 0 : i64, scratch_operands = 0 : i64, tpu.core_type = #tpu.core_type<tc>, window_params = [{transform_indices = @transform_0, window_bounds = array<i64: 1, 4, 2, 128>}, {transform_indices = @transform_1, window_bounds = array<i64: 1, 1, 2, 128>}, {transform_indices = @transform_2, window_bounds = array<i64: 1, 1, 1, 128>}]} {
    %c0 = arith.constant 0 : index
    %c0_0 = arith.constant 0 : index
    %c0_1 = arith.constant 0 : index
    %c0_2 = arith.constant 0 : index
    %0 = vector.load %arg3[%c0, %c0_0, %c0_1, %c0_2] : memref<1x1x2x128xi32, #tpu.memory_space<vmem>>, vector<1x1x2x128xi32>
    %1 = vector.shape_cast %0 : vector<1x1x2x128xi32> to vector<2x128xi32>
    %c0_3 = arith.constant 0 : index
    %c0_4 = arith.constant 0 : index
    %c0_5 = arith.constant 0 : index
    %c0_6 = arith.constant 0 : index
    %2 = vector.load %arg2[%c0_3, %c0_4, %c0_5, %c0_6] : memref<1x4x2x128xf32, #tpu.memory_space<vmem>>, vector<1x1x2x128xf32>
    %3 = vector.shape_cast %2 : vector<1x1x2x128xf32> to vector<2x128xf32>
    %c0_7 = arith.constant 0 : index
    %c1 = arith.constant 1 : index
    %c0_8 = arith.constant 0 : index
    %c0_9 = arith.constant 0 : index
    %4 = vector.load %arg2[%c0_7, %c1, %c0_8, %c0_9] : memref<1x4x2x128xf32, #tpu.memory_space<vmem>>, vector<1x1x2x128xf32>
    %5 = vector.shape_cast %4 : vector<1x1x2x128xf32> to vector<2x128xf32>
    %6 = arith.maximumf %3, %5 : vector<2x128xf32>
    %c0_10 = arith.constant 0 : index
    %c2 = arith.constant 2 : index
    %c0_11 = arith.constant 0 : index
    %c0_12 = arith.constant 0 : index
    %7 = vector.load %arg2[%c0_10, %c2, %c0_11, %c0_12] : memref<1x4x2x128xf32, #tpu.memory_space<vmem>>, vector<1x1x2x128xf32>
    %8 = vector.shape_cast %7 : vector<1x1x2x128xf32> to vector<2x128xf32>
    %9 = arith.maximumf %6, %8 : vector<2x128xf32>
    %c0_13 = arith.constant 0 : index
    %c3 = arith.constant 3 : index
    %c0_14 = arith.constant 0 : index
    %c0_15 = arith.constant 0 : index
    %10 = vector.load %arg2[%c0_13, %c3, %c0_14, %c0_15] : memref<1x4x2x128xf32, #tpu.memory_space<vmem>>, vector<1x1x2x128xf32>
    %11 = vector.shape_cast %10 : vector<1x1x2x128xf32> to vector<2x128xf32>
    %12 = arith.maximumf %9, %11 : vector<2x128xf32>
    %cst = arith.constant 0.000000e+00 : f32
    %13 = vector.broadcast %cst : f32 to vector<2x128xf32>
    %cst_16 = arith.constant 0.000000e+00 : f32
    %14 = vector.broadcast %cst_16 : f32 to vector<2x128xf32>
    %cst_17 = arith.constant 0.000000e+00 : f32
    %15 = vector.broadcast %cst_17 : f32 to vector<2x128xf32>
    %c0_18 = arith.constant 0 : index
    %c0_19 = arith.constant 0 : index
    %c0_20 = arith.constant 0 : index
    %c0_21 = arith.constant 0 : index
    %16 = vector.load %arg2[%c0_18, %c0_19, %c0_20, %c0_21] : memref<1x4x2x128xf32, #tpu.memory_space<vmem>>, vector<1x1x2x128xf32>
    %17 = vector.shape_cast %16 : vector<1x1x2x128xf32> to vector<2x128xf32>
    %18 = arith.subf %17, %12 : vector<2x128xf32>
    %19 = math.exp %18 : vector<2x128xf32>
    %20 = arith.addf %13, %19 : vector<2x128xf32>
    %c0_i32 = arith.constant 0 : i32
    %21 = vector.broadcast %c0_i32 : i32 to vector<2x128xi32>
    %22 = arith.cmpi eq, %1, %21 : vector<2x128xi32>
    %23 = arith.select %22, %17, %15 : vector<2x128xi1>, vector<2x128xf32>
    %24 = arith.select %22, %19, %14 : vector<2x128xi1>, vector<2x128xf32>
    %c0_22 = arith.constant 0 : index
    %c1_23 = arith.constant 1 : index
    %c0_24 = arith.constant 0 : index
    %c0_25 = arith.constant 0 : index
    %25 = vector.load %arg2[%c0_22, %c1_23, %c0_24, %c0_25] : memref<1x4x2x128xf32, #tpu.memory_space<vmem>>, vector<1x1x2x128xf32>
    %26 = vector.shape_cast %25 : vector<1x1x2x128xf32> to vector<2x128xf32>
    %27 = arith.subf %26, %12 : vector<2x128xf32>
    %28 = math.exp %27 : vector<2x128xf32>
    %29 = arith.addf %20, %28 : vector<2x128xf32>
    %c1_i32 = arith.constant 1 : i32
    %30 = vector.broadcast %c1_i32 : i32 to vector<2x128xi32>
    %31 = arith.cmpi eq, %1, %30 : vector<2x128xi32>
    %32 = arith.select %31, %26, %23 : vector<2x128xi1>, vector<2x128xf32>
    %33 = arith.select %31, %28, %24 : vector<2x128xi1>, vector<2x128xf32>
    %c0_26 = arith.constant 0 : index
    %c2_27 = arith.constant 2 : index
    %c0_28 = arith.constant 0 : index
    %c0_29 = arith.constant 0 : index
    %34 = vector.load %arg2[%c0_26, %c2_27, %c0_28, %c0_29] : memref<1x4x2x128xf32, #tpu.memory_space<vmem>>, vector<1x1x2x128xf32>
    %35 = vector.shape_cast %34 : vector<1x1x2x128xf32> to vector<2x128xf32>
    %36 = arith.subf %35, %12 : vector<2x128xf32>
    %37 = math.exp %36 : vector<2x128xf32>
    %38 = arith.addf %29, %37 : vector<2x128xf32>
    %c2_i32 = arith.constant 2 : i32
    %39 = vector.broadcast %c2_i32 : i32 to vector<2x128xi32>
    %40 = arith.cmpi eq, %1, %39 : vector<2x128xi32>
    %41 = arith.select %40, %35, %32 : vector<2x128xi1>, vector<2x128xf32>
    %42 = arith.select %40, %37, %33 : vector<2x128xi1>, vector<2x128xf32>
    %c0_30 = arith.constant 0 : index
    %c3_31 = arith.constant 3 : index
    %c0_32 = arith.constant 0 : index
    %c0_33 = arith.constant 0 : index
    %43 = vector.load %arg2[%c0_30, %c3_31, %c0_32, %c0_33] : memref<1x4x2x128xf32, #tpu.memory_space<vmem>>, vector<1x1x2x128xf32>
    %44 = vector.shape_cast %43 : vector<1x1x2x128xf32> to vector<2x128xf32>
    %45 = arith.subf %44, %12 : vector<2x128xf32>
    %46 = math.exp %45 : vector<2x128xf32>
    %47 = arith.addf %38, %46 : vector<2x128xf32>
    %c3_i32 = arith.constant 3 : i32
    %48 = vector.broadcast %c3_i32 : i32 to vector<2x128xi32>
    %49 = arith.cmpi eq, %1, %48 : vector<2x128xi32>
    %50 = arith.select %49, %44, %41 : vector<2x128xi1>, vector<2x128xf32>
    %51 = arith.select %49, %46, %42 : vector<2x128xi1>, vector<2x128xf32>
    %52 = math.log %47 : vector<2x128xf32>
    %53 = arith.subf %12, %50 : vector<2x128xf32>
    %54 = arith.addf %52, %53 : vector<2x128xf32>
    %55 = arith.divf %51, %47 : vector<2x128xf32>
    %cst_34 = arith.constant 1.000000e+00 : f32
    %56 = vector.broadcast %cst_34 : f32 to vector<2x128xf32>
    %57 = arith.subf %56, %55 : vector<2x128xf32>
    %58 = arith.mulf %57, %57 : vector<2x128xf32>
    %cst_35 = arith.constant 5.000000e-01 : f32
    %59 = vector.broadcast %cst_35 : f32 to vector<2x128xf32>
    %60 = arith.mulf %59, %58 : vector<2x128xf32>
    %61 = arith.mulf %60, %54 : vector<2x128xf32>
    %62 = tpu.iota {dimensions = array<i32: 0>} : vector<2x128xi32>
    %63 = tpu.iota {dimensions = array<i32: 1>} : vector<2x128xi32>
    %c2_i32_36 = arith.constant 2 : i32
    %64 = arith.muli %arg1, %c2_i32_36 : i32
    %65 = vector.broadcast %64 : i32 to vector<2x128xi32>
    %66 = arith.addi %65, %62 : vector<2x128xi32>
    %c128_i32 = arith.constant 128 : i32
    %67 = vector.broadcast %c128_i32 : i32 to vector<2x128xi32>
    %68 = arith.muli %66, %67 : vector<2x128xi32>
    %69 = arith.addi %68, %63 : vector<2x128xi32>
    %c256_i32 = arith.constant 256 : i32
    %70 = vector.broadcast %c256_i32 : i32 to vector<2x128xi32>
    %71 = arith.cmpi slt, %69, %70 : vector<2x128xi32>
    %cst_37 = arith.constant 0.000000e+00 : f32
    %72 = vector.broadcast %cst_37 : f32 to vector<2x128xf32>
    %73 = arith.select %71, %61, %72 : vector<2x128xi1>, vector<2x128xf32>
    %cst_38 = arith.constant dense<0.000000e+00> : vector<128xf32>
    %74 = vector.multi_reduction <add>, %73, %cst_38 [0] : vector<2x128xf32> to vector<128xf32>
    %75 = vector.shape_cast %74 : vector<128xf32> to vector<1x1x1x128xf32>
    %c0_39 = arith.constant 0 : index
    %c0_40 = arith.constant 0 : index
    %c0_41 = arith.constant 0 : index
    %c0_42 = arith.constant 0 : index
    %76 = vector.load %arg4[%c0_39, %c0_40, %c0_41, %c0_42] : memref<1x1x1x128xf32, #tpu.memory_space<vmem>>, vector<1x1x1x128xf32>
    tpu.vector_store %arg4[%c0_39, %c0_40, %c0_41, %c0_42], %75 {strides = array<i32>} : memref<1x1x1x128xf32, #tpu.memory_space<vmem>>, vector<1x1x1x128xf32>,
    return
  }
  func.func @transform_0(%arg0: i32, %arg1: i32) -> (i32, i32, i32, i32) {
    %c0_i32 = arith.constant 0 : i32
    %c0_i32_0 = arith.constant 0 : i32
    %c0_i32_1 = arith.constant 0 : i32
    return %arg0, %c0_i32, %arg1, %c0_i32_0 : i32, i32, i32, i32
  }
  func.func @transform_1(%arg0: i32, %arg1: i32) -> (i32, i32, i32, i32) {
    %c0_i32 = arith.constant 0 : i32
    %c0_i32_0 = arith.constant 0 : i32
    %c0_i32_1 = arith.constant 0 : i32
    return %arg0, %c0_i32, %arg1, %c0_i32_0 : i32, i32, i32, i32
  }
  func.func @transform_2(%arg0: i32, %arg1: i32) -> (i32, i32, i32, i32) {
    %c0_i32 = arith.constant 0 : i32
    %c0_i32_0 = arith.constant 0 : i32
    %c0_i32_1 = arith.constant 0 : i32
    return %arg0, %arg1, %c0_i32, %c0_i32_0 : i32, i32, i32, i32
  }
}

</mosaic_0001>

<bundles_post_ra>
// kernel: tpu_custom_call.1
= control target key start
LH: loop header
LB: loop body
LE: loop exit
PB: predicated region body
PF: predicated region fallthrough
CT: control target
= control target key end

     0   :  { %7 = vsyncpa [#allocation3], 0  ;;  %s827_s0 = inlined_call_operand.hbm [shape: f32[2,4,2,128], index: 0, kind: input, shape index: {}]   ;;  %s828_s1 = inlined_call_operand.hbm [shape: s32[2,1,2,128], index: 1, kind: input, shape index: {}]   ;;  %s829_s2 = inlined_call_operand.hbm [shape: f32[2,1,1,128], index: 2, kind: output, shape index: {}]  }
   0x1   :  { %9 = vsyncpa [#allocation3 + $0x1], 0 }
   0x2   :  { %10 = vsyncpa [#allocation6], 0 }
   0x3   :  { %12 = vsyncpa [#allocation6 + $0x1], 0 }
   0x4   :  { %13 = vsyncpa [#allocation4], 0 }
   0x5   :  { %15 = vsyncpa [#allocation4 + $0x1], 0  ;;  %s664_s9 = smov 0   ;;  %s666_s10 = smov 0  }
   0x6   :  { %s668_s11 = smov 0   ;;  %s670_s12 = smov 0  }
   0x7   :  { %s672_s13 = smov 0   ;;  %s674_s14 = smov 0  }
   0x8 LB: > { %s402_s15 = sadd.s32 4294967295, %s642_s14   ;;  %s403_s16 = sadd.s32 4294967294, %s642_s14   ;;  %s642_s14 = sphi %s674_s14, %s21_s14   ;;  %s638_s13 = sphi %s672_s13, %s841_s13   ;;  %s634_s12 = sphi %s670_s12, %s840_s12   ;;  %s630_s11 = sphi %s668_s11, %s839_s11   ;;  %s626_s10 = sphi %s666_s10, %s838_s10   ;;  %s622_s9 = sphi %s664_s9, %s837_s9  }
   0x9   : > { %s33_s17 = sadd.s32 1, %s638_s13  ;;  %s42_s18 = sadd.s32 1, %s630_s11 }
   0xa   : > { %p35_p0 = scmp.ge.s32.totalorder %s33_s17, 2  ;;  %p49_p1 = scmp.ne.s32.totalorder %s630_s11, %s626_s10 }
   0xb   : > { %p50_p2 = scmp.eq.s32.totalorder %s642_s14, 0  ;;  %p55_p3 = scmp.ne.s32.totalorder %s626_s10, %s622_s9 }
   0xc   : > { %s843_s17 = smov (%p35_p0, %s33_s17), 0  ;;  %p56_p5 = scmp.eq.s32.totalorder %s402_s15, 0 }
   0xd   : > { %p705_p4 = por %p50_p2, %p49_p1  ;;  %s37_s20 = ssub.s32 %s638_s13, %s843_s17 }
   0xe   : > { %p109_p6 = scmp.eq.s32.totalorder %s402_s15, 1  ;;  %p40_p7 = scmp.eq.s32.totalorder %s37_s20, 0 }
   0xf   : > { %p711_p8 = por %p56_p5, %p55_p3  ;;  %p115_p10 = scmp.eq.s32.totalorder %s403_s16, 1 }
  0x10   : > { %p715_p9 = por %p109_p6, %p49_p1  ;;  %p438_p13 = scmp.lt.s32.totalorder %s642_s14, 2 }
  0x11   : > { %s720_s23 = scalar_select %p40_p7, %s630_s11, %s42_s18  }
  0x12   : > { %p722_p11 = por %p115_p10, %p55_p3  ;;  %s729_s25 = sand.u32 1, %s630_s11  }
  0x13   : > { %s406_s26 = sshll.u32 %s729_s25, 3  ;;  %s420_s27 = sshll.u32 %s638_s13, 7 }
  0x14   : > { %s146_s30 = scalar_lea.hbm %s827_s0, %s420_s27  ;;  %s139_s3 = scalar_lea.vmem [#allocation2], %s406_s26 }
  0x15   : > { %s147_s4 = sshll.u32 %s139_s3, 4  ;;  %p738_p0 = pnand %p438_p13, %p705_p4  ;;  %s148_s4 = int_to_ptr.vmem [resolvable:$true] %s147_s4 }
  0x16   : > { %p411_p1 = scmp.ge.s32.totalorder %s642_s14, 1  ;;  %s136_s6 = scalar_lea.sflag [#allocation3], %s729_s25 }
  0x17   : > { %p504_p2 = pneg %p738_p0  ;;  %s515_s7 = scalar_lea.vmem %s148_s4, 128 }
  0x18   : > { %p516_p3 = scmp.ne.s32.totalorder %s148_s4, %s515_s7  ;;  %s644_s8 = smov [#allocation2]  }
  0x19   : > { %s520_s15 = sshll.u32 %s644_s8, 4  ;;  %s521_s15 = int_to_ptr.vmem [resolvable:$false] %s520_s15 }
  0x1a   : > { %p518_p5 = pnand %p516_p3, %p504_p2  ;;  %s522_s16 = scalar_lea.vmem %s521_s15, 256 }
  0x1b   : > { %p523_p4 = scmp.lt.s32.totalorder %s148_s4, %s521_s15  ;;  %p524_p7 = scmp.lt.s32.totalorder %s522_s16, %s515_s7 }
  0x1c   : > { %p519_p6 = pneg %p518_p5 }
  0x1d   : > { %p525_p10 = por %p524_p7, %p523_p4 }
  0x1f   : > { %p526_p13 = pnand %p525_p10, %p519_p6 }
  0x21   : > { %529 = shalt.err (!%p526_p13)
}
  0x22   : > { %s645_s18 = smov 32   ;;  %s646_s19 = smov 2  }
  0x23   : > { %430 = dma.hbm_to_vmem [thread:$0]  (!%p738_p0), %s146_s30, 128, %s148_s4, %s136_s6, %s645_s18, %s645_s18, %s646_s19  }
  0x24   : > { %p174_p3 = scmp.lt.s32.totalorder %s642_s14, 3  ;;  %s409_s20 = sshll.u32 %s729_s25, 1 }
  0x25   : > { %s410_s26 = sshll.u32 %s638_s13, 5  ;;  %s161_s7 = scalar_lea.vmem [#allocation5], %s409_s20 }
  0x26   : > { %p756_p5 = pnand %p411_p1, %p174_p3  ;;  %s167_s3 = scalar_lea.hbm %s828_s1, %s410_s26 }
  0x27   : > { %s169_s8 = sshll.u32 %s161_s7, 4  ;;  %s158_s15 = scalar_lea.sflag [#allocation6], %s729_s25  ;;  %s170_s8 = int_to_ptr.vmem [resolvable:$true] %s169_s8 }
  0x28   : > { %s543_s16 = scalar_lea.vmem %s170_s8, 32  ;;  %s647_s30 = smov [#allocation5]  }
  0x29   : > { %p544_p6 = scmp.ne.s32.totalorder %s170_s8, %s543_s16  ;;  %s548_s4 = sshll.u32 %s647_s30, 4  ;;  %s549_s4 = int_to_ptr.vmem [resolvable:$false] %s548_s4 }
  0x2a   : > { %s550_s6 = scalar_lea.vmem %s549_s4, 64  ;;  %p551_p1 = scmp.lt.s32.totalorder %s170_s8, %s549_s4 }
  0x2b   : > { %p546_p4 = pnand %p544_p6, %p504_p2  ;;  %p552_p10 = scmp.lt.s32.totalorder %s550_s6, %s543_s16 }
  0x2d   : > { %p547_p7 = pneg %p546_p4  ;;  %p553_p13 = por %p552_p10, %p551_p1 }
  0x2f   : > { %p554_p3 = pnand %p553_p13, %p547_p7 }
  0x31   : > { %557 = shalt.err (!%p554_p3)
}
  0x32   : > { %433 = dma.hbm_to_vmem [thread:$0]  (!%p738_p0), %s167_s3, 32, %s170_s8, %s158_s15  }
  0x33   : > { %178 = sbr.rel (%p756_p5) target bundleno = 144 (0x90), region = 28  ;;  %s772_s25 = sand.u32 (!%p756_p5), 1, %s626_s10  }
  0x34   : > { %s412_s18 = sshll.u32 (!%p756_p5), %s772_s25, 3  ;;  %s181_s19 = scalar_lea.sflag (!%p756_p5), [#allocation3], %s772_s25 }
  0x35   : > { %s184_s20 = scalar_lea.vmem (!%p756_p5), [#allocation2], %s412_s18 }
  0x38   : > { %609 = dma.done.wait (%p711_p8), %s181_s19, 128  }
  0x39   : > { %611 = vsyncadd (%p711_p8), %s181_s19, 4294967168  ;;  %s413_s5 = sshll.u32 %s772_s25, 1  ;;  %s190_s26 = scalar_lea.sflag [#allocation6], %s772_s25 }
  0x3a   : > { %s193_s27 = scalar_lea.vmem [#allocation5], %s413_s5 }
  0x3b   : > { %613 = dma.done.wait (%p711_p8), %s190_s26, 32  }
  0x3c   : > { %615 = vsyncadd (%p711_p8), %s190_s26, 4294967264  ;;  %v219_v0 = vld [vmem:[%s184_s20] sm:$0x3]  ;;  %v414_v1 = vld [vmem:[%s184_s20 + $0x2] sm:$0x3]  ;;  %v267_v27 = vlaneseq  ;;  %vm278_vm5 = vcmask 1041408  }
  0x3d   : > { %v222_v2 = vmax.f32 %v219_v0, %v414_v1  ;;  %v415_v3 = vld [vmem:[%s184_s20 + $0x4] sm:$0x3]  ;;  %v416_v4 = vld [vmem:[%s184_s20 + $0x6] sm:$0x3]  ;;  %v218_v21 = vld [vmem:[%s193_s27] sm:$0x3] }
  0x3e   : > { %vm233_vm0 = vcmp.eq.s32.totalorder %v218_v21, 0  ;;  %vm240_vm1 = vcmp.eq.s32.totalorder %v218_v21, 1  ;;  %vm247_vm2 = vcmp.eq.s32.totalorder %v218_v21, 2  ;;  %vm254_vm3 = vcmp.eq.s32.totalorder %v218_v21, 3  ;;  %s217_s21 = scalar_lea.vmem [#allocation7], %s772_s25  ;;  %s417_s29 = sshll.u32 %s634_s12, 4 }
  0x3f   : > { %v225_v5 = vmax.f32 %v222_v2, %v415_v3  ;;  %v234_v23 = vsel %vm233_vm0, %v219_v0, 0.0  ;;  %v268_v30 = vshrl.u32 %v267_v27, 7  ;;  %v270_v35 = vand.u32 127, %v267_v27  ;;  %s301_s28 = sshll.u32 %s217_s21, 4  ;;  %s299_s8 = scalar_lea.hbm %s829_s2, %s417_s29  ;;  %s302_s28 = int_to_ptr.vmem [resolvable:$true] %s301_s28 }
  0x40   : > { %v241_v25 = vsel %vm240_vm1, %v414_v1, %v234_v23  ;;  %s288_s15 = scalar_lea.sflag [#allocation4], %s772_s25  ;;  %s558_s16 = scalar_lea.vmem %s302_s28, 16 }
  0x41   : > { %v228_v6 = vmax.f32 %v225_v5, %v416_v4  ;;  %v248_v28 = vsel %vm247_vm2, %v415_v3, %v241_v25  ;;  %v274_v36 = vmul.u32 128, %v268_v30  ;;  %p559_p8 = scmp.ne.s32.totalorder %s302_s28, %s558_s16  ;;  %s648_s30 = smov [#allocation7]  }
  0x42   : > { %v255_v31 = vsel %vm254_vm3, %v416_v4, %v248_v28  ;;  %s562_s4 = sshll.u32 %s648_s30, 4  ;;  %s563_s4 = int_to_ptr.vmem [resolvable:$false] %s562_s4 }
  0x43   : > { %v229_v7 = vsub.f32 %v219_v0, %v228_v6  ;;  %v236_v8 = vsub.f32 %v414_v1, %v228_v6  ;;  %v243_v9 = vsub.f32 %v415_v3, %v228_v6  ;;  %v250_v10 = vsub.f32 %v416_v4, %v228_v6  ;;  %p560_p0 = pnand %p559_p8, %p715_p9  ;;  %s564_s6 = scalar_lea.vmem %s563_s4, 32 }
  0x44   : > { %v259_v38 = vsub.f32 %v228_v6, %v255_v31  ;;  %v275_v41 = vadd.s32 %v274_v36, %v270_v35  ;;  %p565_p5 = scmp.lt.s32.totalorder %s302_s28, %s563_s4  ;;  %p566_p6 = scmp.lt.s32.totalorder %s564_s6, %s558_s16 }
  0x45   : > { %v230_v11 = vmul.f32 1.442695, %v229_v7  ;;  %v237_v12 = vmul.f32 1.442695, %v236_v8  ;;  %v244_v13 = vmul.f32 1.442695, %v243_v9  ;;  %p561_p2 = pneg %p560_p0 }
  0x46   : > { %v251_v14 = vmul.f32 1.442695, %v250_v10  ;;  %vm276_vm4 = vcmp.lt.s32.totalorder %v275_v41, 256  ;;  %p567_p4 = por %p566_p6, %p565_p5 }
  0x47   : > { %490 = vpow2.f32 %v230_v11 }
  0x48   : > { %492 = vpow2.f32 %v237_v12  ;;  %p568_p7 = pnand %p567_p4, %p561_p2 }
  0x49   : > { %494 = vpow2.f32 %v244_v13 }
  0x4a   : > { %496 = vpow2.f32 %v251_v14 }
  0x54   : > { %v491_v15 = vpop.eup %490 }
  0x55   : > { %v493_v16 = vpop.eup %492  ;;  %v235_v24 = vsel %vm233_vm0, %v491_v15, 0.0 }
  0x56   : > { %v495_v17 = vpop.eup %494  ;;  %v239_v18 = vadd.f32 %v493_v16, %v491_v15  ;;  %v242_v26 = vsel %vm240_vm1, %v493_v16, %v235_v24 }
  0x57   : > { %v497_v19 = vpop.eup %496  ;;  %v249_v29 = vsel %vm247_vm2, %v495_v17, %v242_v26 }
  0x58   : > { %v246_v20 = vadd.f32 %v495_v17, %v239_v18  ;;  %v256_v32 = vsel %vm254_vm3, %v497_v19, %v249_v29 }
  0x5a   : > { %v253_v22 = vadd.f32 %v497_v19, %v246_v20 }
  0x5c   : > { %498 = vlog2.f32 %v253_v22 }
  0x5d   : > { %500 = vrcp.f32 %v253_v22 }
  0x69   : > { %v499_v33 = vpop.eup %498 }
  0x6a   : > { %v501_v34 = vpop.eup %500  ;;  %v258_v37 = vmul.f32 0.6931472, %v499_v33 }
  0x6b   : > { %v262_v39 = vmul.f32 %v501_v34, %v256_v32 }
  0x6c   : > { %v260_v42 = vadd.f32 %v259_v38, %v258_v37 }
  0x6d   : > { %v263_v40 = vsub.f32 1.0, %v262_v39 }
  0x6f   : > { %v264_v43 = vmul.f32 %v263_v40, %v263_v40 }
  0x71   : > { %v265_v44 = vmul.f32 0.5, %v264_v43 }
  0x73   : > { %v266_v45 = vmul.f32 %v265_v44, %v260_v42 }
  0x75   : > { %v277_v46 = vsel %vm276_vm4, %v266_v45, 0.0 }
  0x76   : > { %v279_v47 = vsel %vm278_vm5, %v277_v46, 0.0 }
  0x77   : > { %v280_v48 = vrot.slane %v279_v47, 4 }
  0x79   : > { %v281_v49 = vadd.f32 %v280_v48, %v279_v47 }
  0x7b   : > { %v282_v50 = vrot.slane %v281_v49, 2 }
  0x7d   : > { %v283_v51 = vadd.f32 %v282_v50, %v281_v49 }
  0x7f   : > { %v284_v52 = vrot.slane %v283_v51, 1 }
  0x81   : > { %v285_v53 = vadd.f32 %v284_v52, %v283_v51 }
  0x83   : > { %286 = vst [vmem:[%s217_s21] sm:$0x1] %v285_v53 }
  0x84   : > { %571 = shalt.err (!%p568_p7)
}
  0x85   : > { %s572_s12 = scalar_lea.hbm %s299_s8, 16  ;;  %s576_s19 = scalar_lea.hbm %s829_s2, 32 }
  0x86   : > { %p573_p1 = scmp.ne.s32.totalorder %s299_s8, %s572_s12  ;;  %p577_p3 = scmp.lt.s32.totalorder %s299_s8, %s829_s2 }
  0x87   : > { %p578_p8 = scmp.lt.s32.totalorder %s576_s19, %s572_s12 }
  0x88   : > { %p574_p10 = pnand %p573_p1, %p715_p9 }
  0x89   : > { %p579_p0 = por %p578_p8, %p577_p3 }
  0x8a   : > { %p575_p13 = pneg %p574_p10 }
  0x8c   : > { %p580_p12 = pnand %p579_p0, %p575_p13 }
  0x8e   : > { %583 = shalt.err (!%p580_p12)
}
  0x8f   : > { %425 = dma.vmem_to_hbm [thread:$0]  (%p715_p9), %s302_s28, 16, %s299_s8, %s288_s15  }
  0x90 PF: > { %s313_s26 = sand.u32 1, %s622_s9   ;;  %p836_p2 = scmp.ge.s32.totalorder %s642_s14, 2 }
  0x91   : > { %s314_s27 = scalar_lea.sflag [#allocation4], %s313_s26 }
  0x92   : > { %p435_p5 = pnand %p836_p2, %p722_p11 }
  0x94   : > { %p436_p6 = pneg %p435_p5 }
  0x96   : > { %617 = dma.done.wait (%p436_p6), %s314_s27, 16  }
  0x97   : > { %619 = vsyncadd (%p436_p6), %s314_s27, 4294967280  ;;  %s21_s14 = sadd.s32 1, %s642_s14   ;;  %s837_s9 = smov %s626_s10 }
  0x98   : > { %p18_p4 = scmp.ge.s32.totalorder %s21_s14, 4   ;;  %s838_s10 = smov %s630_s11 }
  0x99   : > { %s839_s11 = smov %s720_s23  ;;  %s840_s12 = smov %s638_s13 }
  0x9a   : > { %s841_s13 = smov %s843_s17  ;;  %20 = sbr.rel (!%p18_p4) target bundleno = 8 (0x8), region = 89 }
  0x9f   :  { %318 = vsyncpa [#allocation3], 1 }
  0xa0   :  { %320 = vsyncpa [#allocation3 + $0x1], 1 }
  0xa1   :  { %321 = vsyncpa [#allocation6], 1 }
  0xa2   :  { %323 = vsyncpa [#allocation6 + $0x1], 1 }
  0xa3   :  { %324 = vsyncpa [#allocation4], 1 }
  0xa4   :  { %326 = vsyncpa [#allocation4 + $0x1], 1 }

</bundles_post_ra>
